<compile_context>
chip_gen: v5e
topology: v5e:2x2
jax: 0.10.0
libtpu: 0.0.40
codegen_flags: <defaults>
</compile_context>

<pallas_src>
import functools
import math

import jax
import jax.numpy as jnp
from jax.experimental import pallas as pl
from jax.experimental.pallas import tpu as pltpu


_SMALL_FANIN = 8    # layer-0 fan-in below which we use the VPU broadcast path
_SMALL_FANOUT = 8   # last-layer fan-out below which we use the lane-reduce path


def _round_up(x, m):
    return (x + m - 1) // m * m


def _default_use_bf16():
    """bf16 MXU fast path on v6e / v7x; keep f32 on v5e (and unknown chips)."""
    try:
        kind = jax.devices()[0].device_kind.lower()
    except Exception:
        return False
    return ("v6" in kind) or ("v7" in kind) or ("7x" in kind)


def _fused_mlp_kernel(x_ref, w_ref, b_ref, wl_ref, bl_ref, o_ref, *,
                      depth, fin, n_out, pad, fin_small, out_small, use_bf16):
    """One batch tile through the whole MLP, entirely in VMEM.

    x_ref : (TB, Fin)        natural-width input tile (no lane padding in HBM)
    w_ref : (depth, P, P)    pre-transposed, zero-padded weights (VMEM resident)
    b_ref : (depth, 1, P)    zero-padded biases, f32 (VMEM resident)
    wl_ref: (n_out, P)       last-layer weight in original (out, in) layout
    bl_ref: (1, n_out)       last-layer bias, f32
    o_ref : (TB, n_out)      natural-width output tile
    """
    f32 = jnp.float32

    def mxu_in(v):            # cast MXU inputs to bf16 on the fast path
        return v.astype(jnp.bfloat16) if use_bf16 else v

    def as_f32(v):            # widen stored bf16 weights for VPU math
        return v.astype(f32) if use_bf16 else v

    # ---- layer 0 (Fin -> P) ----
    if fin_small:
        # Tiny fan-in (PINN case): Fin rank-1 broadcast-adds on the VPU.
        # No MXU pass and no lane padding of x anywhere.
        h = x_ref[:, 0:1] * as_f32(w_ref[0, 0:1, :]) + b_ref[0]
        for f in range(1, fin):
            h = h + x_ref[:, f:f + 1] * as_f32(w_ref[0, f:f + 1, :])
    else:
        # Zero-extend to the 128-lane slab inside VMEM; padded weight rows are
        # zero so the result is exact.
        xp = jnp.pad(x_ref[...], ((0, 0), (0, pad - fin)))
        h = jnp.dot(mxu_in(xp), w_ref[0], preferred_element_type=f32) + b_ref[0]
    h = jnp.tanh(h)

    # ---- hidden layers 1 .. depth-2 (P -> P on the MXU, f32 accumulate) ----
    for l in range(1, depth - 1):
        h = jnp.dot(mxu_in(h), w_ref[l], preferred_element_type=f32) + b_ref[l]
        h = jnp.tanh(h)

    # ---- last layer (P -> n_out), no activation ----
    if out_small:
        # VPU multiply + XLU lane reduction per output column; avoids a
        # 128-wide MXU pass and keeps the output store at its natural width.
        cols = [jnp.sum(h * as_f32(wl_ref[j:j + 1, :]), axis=-1, keepdims=True)
                for j in range(n_out)]
        out = cols[0] if n_out == 1 else jnp.concatenate(cols, axis=-1)
        out = out + bl_ref[...]
    else:
        hl = jnp.dot(mxu_in(h), w_ref[depth - 1], preferred_element_type=f32)
        out = hl[:, :n_out] + bl_ref[...]

    o_ref[...] = out.astype(o_ref.dtype)


def fused_mlp_forward(x, w_stack, b_stack, w_last, b_last, *,
                      layer_sizes, batch_tile=1024, use_bf16=False):
    """x: (B, Fin) f32  ->  (B, out_features) f32."""
    depth = len(layer_sizes) - 1
    fin = layer_sizes[0]
    n_out = layer_sizes[-1]
    P = w_stack.shape[-1]
    B = x.shape[0]

    fin_small = fin <= _SMALL_FANIN
    out_small = n_out <= _SMALL_FANOUT

    # Batch tiling: sublane-aligned tiles, and at least 2 grid steps whenever
    # the batch allows it so the "parallel" axis can use both v7x TensorCores.
    TB = min(batch_tile, max(8, _round_up((B + 1) // 2, 8)))
    B_pad = _round_up(max(B, 8), TB)
    grid = (B_pad // TB,)

    x_in = x if B_pad == B else jnp.pad(x, ((0, B_pad - B), (0, 0)))

    # Honest cost hint (de-padded HBM traffic, padded MXU flops).
    mm_flops = (depth - 2) * P * P
    mm_flops += (fin * P) if fin_small else (P * P)
    mm_flops += (P * n_out) if out_small else (P * P)
    flops = 2 * B_pad * mm_flops
    transcendentals = B_pad * P * (depth - 1)
    bytes_accessed = (x_in.size * x_in.dtype.itemsize
                      + w_stack.size * w_stack.dtype.itemsize
                      + b_stack.size * b_stack.dtype.itemsize
                      + w_last.size * w_last.dtype.itemsize
                      + b_last.size * b_last.dtype.itemsize
                      + B_pad * n_out * 4)

    out_pad = pl.pallas_call(
        functools.partial(_fused_mlp_kernel,
                          depth=depth, fin=fin, n_out=n_out, pad=P,
                          fin_small=fin_small, out_small=out_small,
                          use_bf16=use_bf16),
        out_shape=jax.ShapeDtypeStruct((B_pad, n_out), x.dtype),
        grid_spec=pl.GridSpec(
            grid=grid,
            in_specs=[
                # activation tile marches over the batch, natural lane width
                pl.BlockSpec((TB, fin), lambda i: (i, 0)),
                # weights / biases: constant block index -> DMA'd once, resident
                pl.BlockSpec((depth, P, P), lambda i: (0, 0, 0)),
                pl.BlockSpec((depth, 1, P), lambda i: (0, 0, 0)),
                pl.BlockSpec((n_out, P), lambda i: (0, 0)),
                pl.BlockSpec((1, n_out), lambda i: (0, 0)),
            ],
            out_specs=pl.BlockSpec((TB, n_out), lambda i: (i, 0)),
        ),
        compiler_params=pltpu.CompilerParams(
            dimension_semantics=("parallel",),
        ),
        cost_estimate=pl.CostEstimate(
            flops=flops,
            transcendentals=transcendentals,
            bytes_accessed=bytes_accessed,
        ),
    )(x_in, w_stack, b_stack, w_last, b_last)

    return out_pad if B_pad == B else out_pad[:B]


class DNN:
    """JAX/Pallas port of the PyTorch DNN module (fused single-kernel MLP)."""

    def __init__(self, layers, key, batch_tile=1024, use_bf16=None):
        self.layer_sizes = tuple(int(l) for l in layers)
        self.depth = len(layers) - 1
        assert self.depth >= 2, "DNN expects at least two Linear layers"
        self.out_features = int(layers[-1])
        self.use_bf16 = _default_use_bf16() if use_bf16 is None else bool(use_bf16)
        w_dtype = jnp.bfloat16 if self.use_bf16 else jnp.float32

        # Single padded width for all MXU layers.
        P = max(128, _round_up(max(self.layer_sizes), 128))
        self.P = P

        self.params = []                       # torch-layout f32 params (reference)
        ws, bs = [], []
        for i in range(self.depth):
            fan_in, fan_out = self.layer_sizes[i], self.layer_sizes[i + 1]
            key, kw, kb = jax.random.split(key, 3)
            bound = 1.0 / math.sqrt(fan_in)
            # torch.nn.Linear default init: U(-1/sqrt(fan_in), 1/sqrt(fan_in))
            w = jax.random.uniform(kw, (fan_out, fan_in), jnp.float32,
                                   minval=-bound, maxval=bound)
            b = jax.random.uniform(kb, (fan_out,), jnp.float32,
                                   minval=-bound, maxval=bound)
            self.params.append((w, b))
            # Pre-transpose + zero-pad ONCE (kernel does x @ W_t directly).
            wp = jnp.zeros((P, P), jnp.float32).at[:fan_in, :fan_out].set(w.T)
            bp = jnp.zeros((1, P), jnp.float32).at[0, :fan_out].set(b)
            ws.append(wp)
            bs.append(bp)

        self.w_stack = jnp.stack(ws).astype(w_dtype)   # (depth, P, P)
        self.b_stack = jnp.stack(bs)                   # (depth, 1, P) f32
        # Last layer also kept in original (out, in) row layout (lane-padded)
        # for the small-fan-out VPU/XLU reduction path.
        w_l, b_l = self.params[-1]
        self.w_last = (jnp.zeros((self.out_features, P), jnp.float32)
                       .at[:, :self.layer_sizes[-2]].set(w_l)).astype(w_dtype)
        self.b_last = jnp.reshape(b_l, (1, self.out_features))

        self._forward = jax.jit(functools.partial(
            fused_mlp_forward,
            layer_sizes=self.layer_sizes,
            batch_tile=batch_tile,
            use_bf16=self.use_bf16))

    def __call__(self, x):
        return self._forward(x, self.w_stack, self.b_stack,
                             self.w_last, self.b_last)


def _reference_forward(params, x, use_bf16=False):
    """Pure-JAX reference.  When use_bf16, mirrors the kernel's quantization
    (bf16-rounded weights; activations rounded only where the kernel feeds
    them to the MXU) so the comparison stays tight."""
    depth = len(params)
    fin_small = params[0][0].shape[1] <= _SMALL_FANIN
    out_small = params[-1][0].shape[0] <= _SMALL_FANOUT
    h = x
    for i, (w, b) in enumerate(params):
        wq = w.astype(jnp.bfloat16).astype(jnp.float32) if use_bf16 else w
        uses_mxu = not ((i == 0 and fin_small) or (i == depth - 1 and out_small))
        hq = (h.astype(jnp.bfloat16).astype(jnp.float32)
              if (use_bf16 and uses_mxu) else h)
        h = jnp.dot(hq, wq.T, precision=jax.lax.Precision.HIGHEST) + b
        if i < depth - 1:
            h = jnp.tanh(h)
    return h


if __name__ == "__main__":
    key = jax.random.PRNGKey(0)
    # Typical PINN-style layer spec (kept small): 2 inputs (x, t) -> 1 output u
    layers = [2, 32, 32, 32, 1]

    key, kmodel, kx1, kx2 = jax.random.split(key, 4)
    model = DNN(layers, kmodel)
    tol = 1e-4 if model.use_bf16 else 1e-5

    # Small demo batch.
    batch = 8
    x = jax.random.normal(kx1, (batch, layers[0]), jnp.float32)
    out = jax.block_until_ready(model(x))
    ref = _reference_forward(model.params, x, use_bf16=model.use_bf16)
    assert out.shape == (batch, layers[-1])
    assert jnp.allclose(out, ref, atol=tol, rtol=tol), \
        "mismatch vs JAX reference (small batch)"

    # Modest batch exercising row padding + a multi-step parallel grid.
    batch2 = 600
    x2 = jax.random.normal(kx2, (batch2, layers[0]), jnp.float32)
    model2 = DNN(layers, kmodel, batch_tile=256)   # same key -> same params
    out2 = jax.block_until_ready(model2(x2))
    ref2 = _reference_forward(model.params, x2, use_bf16=model.use_bf16)
    assert out2.shape == (batch2, layers[-1])
    assert jnp.allclose(out2, ref2, atol=tol, rtol=tol), \
        "mismatch vs JAX reference (tiled batch)"

    print("KERNEL_OK")
</pallas_src>

<mosaic_0001>
module attributes {stable_mosaic.version = 11 : i64} {
  func.func @_fused_mlp_kernel(%arg0: i32, %arg1: memref<8x2xf32, #tpu.memory_space<vmem>>, %arg2: memref<4x128x128xf32, #tpu.memory_space<vmem>>, %arg3: memref<4x1x128xf32, #tpu.memory_space<vmem>>, %arg4: memref<1x128xf32, #tpu.memory_space<vmem>>, %arg5: memref<1x1xf32, #tpu.memory_space<vmem>>, %arg6: memref<8x1xf32, #tpu.memory_space<vmem>>) attributes {dimension_semantics = [#tpu.dimension_semantics<parallel>], iteration_bounds = array<i64: 1>, scalar_prefetch = 0 : i64, scratch_operands = 0 : i64, tpu.core_type = #tpu.core_type<tc>, window_params = [{transform_indices = @transform_0, window_bounds = array<i64: 8, 2>}, {pipeline_mode = #tpu.pipeline_mode<synchronous>, transform_indices = @transform_1, window_bounds = array<i64: 4, 128, 128>}, {pipeline_mode = #tpu.pipeline_mode<synchronous>, transform_indices = @transform_2, window_bounds = array<i64: 4, 1, 128>}, {pipeline_mode = #tpu.pipeline_mode<synchronous>, transform_indices = @transform_3, window_bounds = array<i64: 1, 128>}, {pipeline_mode = #tpu.pipeline_mode<synchronous>, transform_indices = @transform_4, window_bounds = array<i64: 1, 1>}, {transform_indices = @transform_5, window_bounds = array<i64: 8, 1>}]} {
    %c0 = arith.constant 0 : index
    %c0_0 = arith.constant 0 : index
    %0 = vector.load %arg1[%c0, %c0_0] : memref<8x2xf32, #tpu.memory_space<vmem>>, vector<8x1xf32>
    %c0_1 = arith.constant 0 : index
    %c0_2 = arith.constant 0 : index
    %c0_3 = arith.constant 0 : index
    %1 = vector.load %arg2[%c0_1, %c0_2, %c0_3] : memref<4x128x128xf32, #tpu.memory_space<vmem>>, vector<1x1x128xf32>
    %2 = vector.shape_cast %1 : vector<1x1x128xf32> to vector<1x128xf32>
    %3 = vector.broadcast %0 : vector<8x1xf32> to vector<8x128xf32>
    %4 = vector.broadcast %2 : vector<1x128xf32> to vector<8x128xf32>
    %5 = arith.mulf %3, %4 : vector<8x128xf32>
    %c0_4 = arith.constant 0 : index
    %c0_5 = arith.constant 0 : index
    %c0_6 = arith.constant 0 : index
    %6 = vector.load %arg3[%c0_4, %c0_5, %c0_6] : memref<4x1x128xf32, #tpu.memory_space<vmem>>, vector<1x1x128xf32>
    %7 = vector.shape_cast %6 : vector<1x1x128xf32> to vector<1x128xf32>
    %8 = vector.broadcast %7 : vector<1x128xf32> to vector<8x128xf32>
    %9 = arith.addf %5, %8 : vector<8x128xf32>
    %c0_7 = arith.constant 0 : index
    %c1 = arith.constant 1 : index
    %10 = vector.load %arg1[%c0_7, %c1] : memref<8x2xf32, #tpu.memory_space<vmem>>, vector<8x1xf32>
    %c0_8 = arith.constant 0 : index
    %c1_9 = arith.constant 1 : index
    %c0_10 = arith.constant 0 : index
    %11 = vector.load %arg2[%c0_8, %c1_9, %c0_10] : memref<4x128x128xf32, #tpu.memory_space<vmem>>, vector<1x1x128xf32>
    %12 = vector.shape_cast %11 : vector<1x1x128xf32> to vector<1x128xf32>
    %13 = vector.broadcast %10 : vector<8x1xf32> to vector<8x128xf32>
    %14 = vector.broadcast %12 : vector<1x128xf32> to vector<8x128xf32>
    %15 = arith.mulf %13, %14 : vector<8x128xf32>
    %16 = arith.addf %9, %15 : vector<8x128xf32>
    %17 = math.tanh %16 : vector<8x128xf32>
    %c1_11 = arith.constant 1 : index
    %c0_12 = arith.constant 0 : index
    %c0_13 = arith.constant 0 : index
    %18 = vector.load %arg2[%c1_11, %c0_12, %c0_13] : memref<4x128x128xf32, #tpu.memory_space<vmem>>, vector<1x128x128xf32>
    %19 = vector.shape_cast %18 : vector<1x128x128xf32> to vector<128x128xf32>
    %cst = arith.constant dense<0.000000e+00> : vector<8x128xf32>
    %20 = tpu.matmul %17, %19, %cst {dimension_numbers = #tpu.dot_dimension_numbers<[1], [0], [0], [1], [0, 0, 1, 1], [], []>} : vector<8x128xf32>, vector<128x128xf32>, vector<8x128xf32> -> vector<8x128xf32>
    %c1_14 = arith.constant 1 : index
    %c0_15 = arith.constant 0 : index
    %c0_16 = arith.constant 0 : index
    %21 = vector.load %arg3[%c1_14, %c0_15, %c0_16] : memref<4x1x128xf32, #tpu.memory_space<vmem>>, vector<1x1x128xf32>
    %22 = vector.shape_cast %21 : vector<1x1x128xf32> to vector<1x128xf32>
    %23 = vector.broadcast %22 : vector<1x128xf32> to vector<8x128xf32>
    %24 = arith.addf %20, %23 : vector<8x128xf32>
    %25 = math.tanh %24 : vector<8x128xf32>
    %c2 = arith.constant 2 : index
    %c0_17 = arith.constant 0 : index
    %c0_18 = arith.constant 0 : index
    %26 = vector.load %arg2[%c2, %c0_17, %c0_18] : memref<4x128x128xf32, #tpu.memory_space<vmem>>, vector<1x128x128xf32>
    %27 = vector.shape_cast %26 : vector<1x128x128xf32> to vector<128x128xf32>
    %cst_19 = arith.constant dense<0.000000e+00> : vector<8x128xf32>
    %28 = tpu.matmul %25, %27, %cst_19 {dimension_numbers = #tpu.dot_dimension_numbers<[1], [0], [0], [1], [0, 0, 1, 1], [], []>} : vector<8x128xf32>, vector<128x128xf32>, vector<8x128xf32> -> vector<8x128xf32>
    %c2_20 = arith.constant 2 : index
    %c0_21 = arith.constant 0 : index
    %c0_22 = arith.constant 0 : index
    %29 = vector.load %arg3[%c2_20, %c0_21, %c0_22] : memref<4x1x128xf32, #tpu.memory_space<vmem>>, vector<1x1x128xf32>
    %30 = vector.shape_cast %29 : vector<1x1x128xf32> to vector<1x128xf32>
    %31 = vector.broadcast %30 : vector<1x128xf32> to vector<8x128xf32>
    %32 = arith.addf %28, %31 : vector<8x128xf32>
    %33 = math.tanh %32 : vector<8x128xf32>
    %c0_23 = arith.constant 0 : index
    %c0_24 = arith.constant 0 : index
    %34 = vector.load %arg4[%c0_23, %c0_24] : memref<1x128xf32, #tpu.memory_space<vmem>>, vector<1x128xf32>
    %35 = vector.broadcast %34 : vector<1x128xf32> to vector<8x128xf32>
    %36 = arith.mulf %33, %35 : vector<8x128xf32>
    %cst_25 = arith.constant dense<0.000000e+00> : vector<8xf32>
    %37 = vector.multi_reduction <add>, %36, %cst_25 [1] : vector<8x128xf32> to vector<8xf32>
    %38 = vector.shape_cast %37 : vector<8xf32> to vector<8x1xf32>
    %c0_26 = arith.constant 0 : index
    %c0_27 = arith.constant 0 : index
    %39 = vector.load %arg5[%c0_26, %c0_27] : memref<1x1xf32, #tpu.memory_space<vmem>>, vector<1x1xf32>
    %40 = vector.broadcast %39 : vector<1x1xf32> to vector<8x1xf32>
    %41 = arith.addf %38, %40 : vector<8x1xf32>
    %c0_28 = arith.constant 0 : index
    %c0_29 = arith.constant 0 : index
    %42 = vector.load %arg6[%c0_28, %c0_29] : memref<8x1xf32, #tpu.memory_space<vmem>>, vector<8x1xf32>
    tpu.vector_store %arg6[%c0_28, %c0_29], %41 {strides = array<i32>} : memref<8x1xf32, #tpu.memory_space<vmem>>, vector<8x1xf32>,
    return
  }
  func.func @transform_0(%arg0: i32) -> (i32, i32) {
    %c0_i32 = arith.constant 0 : i32
    %c0_i32_0 = arith.constant 0 : i32
    return %arg0, %c0_i32 : i32, i32
  }
  func.func @transform_1(%arg0: i32) -> (i32, i32, i32) {
    %c0_i32 = arith.constant 0 : i32
    %c0_i32_0 = arith.constant 0 : i32
    %c0_i32_1 = arith.constant 0 : i32
    %c0_i32_2 = arith.constant 0 : i32
    return %c0_i32, %c0_i32_0, %c0_i32_1 : i32, i32, i32
  }
  func.func @transform_2(%arg0: i32) -> (i32, i32, i32) {
    %c0_i32 = arith.constant 0 : i32
    %c0_i32_0 = arith.constant 0 : i32
    %c0_i32_1 = arith.constant 0 : i32
    %c0_i32_2 = arith.constant 0 : i32
    return %c0_i32, %c0_i32_0, %c0_i32_1 : i32, i32, i32
  }
  func.func @transform_3(%arg0: i32) -> (i32, i32) {
    %c0_i32 = arith.constant 0 : i32
    %c0_i32_0 = arith.constant 0 : i32
    %c0_i32_1 = arith.constant 0 : i32
    return %c0_i32, %c0_i32_0 : i32, i32
  }
  func.func @transform_4(%arg0: i32) -> (i32, i32) {
    %c0_i32 = arith.constant 0 : i32
    %c0_i32_0 = arith.constant 0 : i32
    %c0_i32_1 = arith.constant 0 : i32
    return %c0_i32, %c0_i32_0 : i32, i32
  }
  func.func @transform_5(%arg0: i32) -> (i32, i32) {
    %c0_i32 = arith.constant 0 : i32
    %c0_i32_0 = arith.constant 0 : i32
    return %arg0, %c0_i32 : i32, i32
  }
}

</mosaic_0001>

<bundles_post_ra>
// kernel: fused_mlp_forward.1
= control target key start
LH: loop header
LB: loop body
LE: loop exit
PB: predicated region body
PF: predicated region fallthrough
CT: control target
= control target key end

     0   :  { %s273_s0 = inlined_call_operand.vmem [shape: f32[8,2], index: 0, kind: input, shape index: {}]   ;;  %s274_s1 = inlined_call_operand.hbm [shape: f32[4,128,128], index: 1, kind: input, shape index: {}]   ;;  %s275_s2 = inlined_call_operand.vmem [shape: f32[4,1,128], index: 2, kind: input, shape index: {}]   ;;  %s276_s3 = inlined_call_operand.vmem [shape: f32[1,128], index: 3, kind: input, shape index: {}]   ;;  %s277_s4 = inlined_call_operand.<no memory space> [shape: f32[1,1], index: 4, kind: input, shape index: {}]   ;;  %s278_s5 = inlined_call_operand.vmem [shape: f32[8,1], index: 5, kind: output, shape index: {}]  }
   0x1   :  { %v10_v0 = vstv %s277_s4 }
   0x2   :  { %11 = vst [vmem:[#allocation2] sm:$0x1] %v10_v0 }
   0x3   :  { %12 = vsyncpa [#allocation4], 0  ;;  %s19_s22 = sshll.u32 %s274_s1, 4  ;;  %s214_s23 = smov [#allocation3]   ;;  %s20_s22 = int_to_ptr.hbm [resolvable:$true] %s19_s22 }
   0x4   :  { %s21_s24 = sshll.u32 %s214_s23, 4  ;;  %s215_s25 = smov 128   ;;  %s22_s24 = int_to_ptr.vmem [resolvable:$true] %s21_s24 }
   0x5   :  { %s216_s26 = smov 8  }
   0x6   :  { %27 = dma.hbm_to_vmem [thread:$0]  %s20_s22, 8192, %s22_s24, [#allocation4], %s215_s25, %s215_s25, %s216_s26  }
   0x7   :  { %212 = dma.done.wait [#allocation4], 8192  }
   0x8   :  { %213 = vsyncadd [#allocation4], 4294959104  ;;  %v217_v1 = vmov 0   ;;  %v38_v2 = vld [vmem:[%s273_s0] sm:$0xff]  ;;  %v76_v4 = vld [vmem:[#allocation3 + $0xf0] sm:$0xff]  ;;  %v218_v9 = vmov 1  }
   0x9   :  { %173 = vset.pattern.permute.xlu0 %v217_v1  ;;  %v77_v3 = vld [vmem:[#allocation3 + $0xf8] sm:$0xff]  ;;  %v75_v5 = vld [vmem:[#allocation3 + $0xe8] sm:$0xff]  ;;  %v74_v6 = vld [vmem:[#allocation3 + $0xe0] sm:$0xff]  ;;  %vm159_vm0 = vcmask 7168  }
   0xa   :  { %42 = vperm.xlu0 %173, %v38_v2   ;;  %83 = vmatpush.msra.mxu0 %v77_v3  ;;  %v73_v7 = vld [vmem:[#allocation3 + $0xd8] sm:$0xff]  ;;  %v72_v8 = vld [vmem:[#allocation3 + $0xd0] sm:$0xff]  ;;  %v71_v10 = vld [vmem:[#allocation3 + $0xc8] sm:$0xff] }
   0xb   :  { %v70_v11 = vld [vmem:[#allocation3 + $0xc0] sm:$0xff]  ;;  %v69_v12 = vld [vmem:[#allocation3 + $0xb8] sm:$0xff]  ;;  %v68_v13 = vld [vmem:[#allocation3 + $0xb0] sm:$0xff] }
   0xc   :  { %84 = vmatpush.msra.mxu0 %v76_v4  ;;  %v67_v14 = vld [vmem:[#allocation3 + $0xa8] sm:$0xff]  ;;  %v66_v15 = vld [vmem:[#allocation3 + $0xa0] sm:$0xff]  ;;  %v65_v16 = vld [vmem:[#allocation3 + $0x98] sm:$0xff] }
   0xd   :  { %v64_v17 = vld [vmem:[#allocation3 + $0x90] sm:$0xff]  ;;  %v63_v18 = vld [vmem:[#allocation3 + $0x88] sm:$0xff]  ;;  %v62_v19 = vld [vmem:[#allocation3 + $0x80] sm:$0xff] }
   0xe   :  { %85 = vmatpush.msra.mxu0 %v75_v5  ;;  %v120_v20 = vld [vmem:[#allocation3 + $0x178] sm:$0xff]  ;;  %v119_v21 = vld [vmem:[#allocation3 + $0x170] sm:$0xff]  ;;  %v118_v22 = vld [vmem:[#allocation3 + $0x168] sm:$0xff] }
   0xf   :  { %126 = vmatpush.msra.mxu1 %v120_v20  ;;  %v117_v23 = vld [vmem:[#allocation3 + $0x160] sm:$0xff]  ;;  %v116_v24 = vld [vmem:[#allocation3 + $0x158] sm:$0xff]  ;;  %v115_v25 = vld [vmem:[#allocation3 + $0x150] sm:$0xff] }
  0x10   :  { %86 = vmatpush.msra.mxu0 %v74_v6  ;;  %v114_v26 = vld [vmem:[#allocation3 + $0x148] sm:$0xff]  ;;  %v113_v28 = vld [vmem:[#allocation3 + $0x140] sm:$0xff]  ;;  %v112_v30 = vld [vmem:[#allocation3 + $0x138] sm:$0xff] }
  0x11   :  { %127 = vmatpush.msra.mxu1 %v119_v21  ;;  %v175_v29 = vld [vmem:[#allocation3] ss:$0 sm:$0xff]  ;;  %v111_v31 = vld [vmem:[#allocation3 + $0x130] sm:$0xff]  ;;  %v176_v32 = vld [vmem:[%s275_s2] ss:$0 sm:$0xff] }
  0x12   :  { %174 = vset.pattern.permute.xlu0 %v218_v9  ;;  %87 = vmatpush.msra.mxu0 %v73_v7  ;;  %v177_v34 = vld [vmem:[#allocation3 + $0x1] ss:$0 sm:$0xff]  ;;  %v110_v35 = vld [vmem:[#allocation3 + $0x128] sm:$0xff]  ;;  %v108_v42 = vld [vmem:[#allocation3 + $0x118] sm:$0xff] }
  0x13   :  { %54 = vperm.xlu0 %174, %v38_v2   ;;  %128 = vmatpush.msra.mxu1 %v118_v22  ;;  %v109_v41 = vld [vmem:[#allocation3 + $0x120] sm:$0xff]  ;;  %v107_v43 = vld [vmem:[#allocation3 + $0x110] sm:$0xff]  ;;  %v106_v44 = vld [vmem:[#allocation3 + $0x108] sm:$0xff] }
  0x14   :  { %88 = vmatpush.msra.mxu0 %v72_v8  ;;  %v105_v45 = vld [vmem:[#allocation3 + $0x100] sm:$0xff]  ;;  %v180_v53 = vld [vmem:[%s276_s3] ss:$0 sm:$0xff] }
  0x15   :  { %129 = vmatpush.msra.mxu1 %v117_v23  ;;  %v178_v46 = vld [vmem:[%s275_s2 + $0x1] ss:$0 sm:$0xff]  ;;  %v179_v50 = vld [vmem:[%s275_s2 + $0x2] ss:$0 sm:$0xff]  ;;  %v181_v56 = vld [vmem:[#allocation2] ss:$0 sm:$0xff] }
  0x16   :  { %89 = vmatpush.msra.mxu0 %v71_v10 }
  0x17   :  { %130 = vmatpush.msra.mxu1 %v116_v24 }
  0x18   :  { %90 = vmatpush.msra.mxu0 %v70_v11 }
  0x19   :  { %131 = vmatpush.msra.mxu1 %v115_v25 }
  0x1a   :  { %91 = vmatpush.msra.mxu0 %v69_v12 }
  0x1b   :  { %132 = vmatpush.msra.mxu1 %v114_v26 }
  0x1c   :  { %92 = vmatpush.msra.mxu0 %v68_v13 }
  0x1d   :  { %133 = vmatpush.msra.mxu1 %v113_v28 }
  0x1e   :  { %93 = vmatpush.msra.mxu0 %v67_v14 }
  0x1f   :  { %134 = vmatpush.msra.mxu1 %v112_v30 }
  0x20   :  { %94 = vmatpush.msra.mxu0 %v66_v15 }
  0x21   :  { %135 = vmatpush.msra.mxu1 %v111_v31 }
  0x22   :  { %95 = vmatpush.msra.mxu0 %v65_v16 }
  0x23   :  { %136 = vmatpush.msra.mxu1 %v110_v35 }
  0x24   :  { %96 = vmatpush.msra.mxu0 %v64_v17 }
  0x25   :  { %137 = vmatpush.msra.mxu1 %v109_v41 }
  0x26   :  { %97 = vmatpush.msra.mxu0 %v63_v18 }
  0x27   :  { %138 = vmatpush.msra.mxu1 %v108_v42 }
  0x28   :  { %98 = vmatpush.msra.mxu0 %v62_v19 }
  0x29   :  { %139 = vmatpush.msra.mxu1 %v107_v43 }
  0x2b   :  { %140 = vmatpush.msra.mxu1 %v106_v44 }
  0x2d   :  { %141 = vmatpush.msra.mxu1 %v105_v45 }
  0x7c   :  { %v43_v27 = vpop.permute.xlu0 %42 }
  0x7d   :  { %v46_v33 = vmul.f32 %v175_v29, %v43_v27 }
  0x7f   :  { %v51_v37 = vadd.f32 %v176_v32, %v46_v33 }
  0x85   :  { %v55_v36 = vpop.permute.xlu0 %54 }
  0x86   :  { %v58_v38 = vmul.f32 %v177_v34, %v55_v36 }
  0x88   :  { %v59_v39 = vadd.f32 %v58_v38, %v51_v37 }
  0x8a   :  { %182 = vtanh.f32 %v59_v39 }
  0x90   :  { %v183_v40 = vpop.eup %182 }
  0x91   :  { %99 = vmatmul.f32.vlgmr.msra.gmra.mxu0 %v183_v40 }
 0x10e   :  { %v100_v47 = vpop.f32.mrf.mxu0 }
 0x10f   :  { %v101_v48 = vadd.f32 %v178_v46, %v100_v47 }
 0x111   :  { %184 = vtanh.f32 %v101_v48 }
 0x117   :  { %v185_v49 = vpop.eup %184 }
 0x118   :  { %142 = vmatmul.f32.vlgmr.msra.gmra.mxu1 %v185_v49 }
 0x195   :  { %v143_v51 = vpop.f32.mrf.mxu1 }
 0x196   :  { %v144_v52 = vadd.f32 %v179_v50, %v143_v51 }
 0x198   :  { %186 = vtanh.f32 %v144_v52 }
 0x19e   :  { %v187_v54 = vpop.eup %186 }
 0x19f   :  { %v151_v55 = vmul.f32 %v187_v54, %v180_v53 }
 0x1a1   :  { %152 = vadd.xlane.f32.xlu1 %v151_v55 }
 0x214   :  { %v153_v57 = vpop.xlane.xlu1 %152 }
 0x215   :  { %v158_v58 = vadd.f32 %v181_v56, %v153_v57 }
 0x217   :  { %160 = vst.msk [vmem:[%s278_s5] sm:$0xff] %vm159_vm0, %v158_v58 }
 0x218   :  { %165 = vsyncpa [#allocation4], 1 }

</bundles_post_ra>
